<compile_context>
chip_gen: v7x
topology: tpu7x:2x2x1
jax: 0.10.0
libtpu: 0.0.40
codegen_flags: <defaults>
</compile_context>

<pallas_src>
import math

import jax
import jax.numpy as jnp
from jax.experimental import pallas as pl
from jax.experimental.pallas import tpu as pltpu

_SQRT_HALF = 0.7071067811865476  # 1/sqrt(2)


def _geglu_kernel(x_ref, w1_ref, b1_ref, w2_ref, b2_ref, o_ref):
    dh = w2_ref.shape[0]                                              # static

    x = x_ref[...]                                                    # (tm, din)
    # Single fused gate projection: (tm, 2*dh), f32 accumulation on the MXU.
    h = jnp.dot(x, w1_ref[...], preferred_element_type=jnp.float32) + b1_ref[...]

    # Static, tile-aligned lane split into the two gate halves (no copy when
    # dh is a multiple of 128).
    h1 = h[:, :dh]
    h2 = h[:, dh:]

    # Exact erf GELU (PyTorch nn.GELU() default), all gate math in f32.
    g = (0.5 * h1 * (1.0 + jax.lax.erf(h1 * _SQRT_HALF))) * h2        # (tm, dh)

    # Output projection; cast the hidden activation to the weight dtype (bf16)
    # for the MXU, accumulate in f32.
    out = jnp.dot(g.astype(w2_ref.dtype), w2_ref[...],
                  preferred_element_type=jnp.float32) + b2_ref[...]   # (tm, dout)
    o_ref[...] = out.astype(o_ref.dtype)


def _round_up(x, m):
    return ((x + m - 1) // m) * m


def _vmem_limit_bytes():
    """~75% of the chip's physical VMEM (leave headroom for compiler scratch)."""
    try:
        cap = getattr(pltpu.get_tpu_info(), "vmem_capacity_bytes", None)
        if cap:
            return int(cap) * 3 // 4        # v7x: ~48 MiB, v5e/v6e: ~96 MiB
    except Exception:
        pass
    return 48 * 1024 * 1024                  # conservative default (fits v7x)


def mlp_geglu(x, w11, b11, w12, b12, w2, b2, *, block_m=256,
              compute_dtype=jnp.bfloat16):
    """Fused GEGLU MLP:  fc2( GELU(fc11(x)) * fc12(x) ).

    x        : [..., in_features]
    w11, w12 : [hidden, in]   (PyTorch nn.Linear layout)
    b11, b12 : [hidden]
    w2       : [out, hidden],  b2 : [out]
    """
    *lead, din = x.shape
    M = math.prod(lead) if lead else 1
    dh = w11.shape[0]
    dout = w2.shape[0]
    out_dtype = x.dtype

    xf = x.reshape(M, din).astype(compute_dtype)

    # Fuse the two gate projections into one weight/bias: one MXU weight-load
    # pass and one DMA instead of two, and one bias add instead of two.
    w1 = jnp.concatenate([jnp.transpose(w11), jnp.transpose(w12)], axis=1)
    w1 = w1.astype(compute_dtype)                                  # (din, 2*dh)
    b1 = jnp.concatenate([b11, b12]).reshape(1, 2 * dh).astype(jnp.float32)
    w2t = jnp.transpose(w2).astype(compute_dtype)                  # (dh, dout)
    b2r = b2.reshape(1, dout).astype(jnp.float32)

    # Row-tile size: multiple of the sublane packing for compute_dtype, big
    # enough to feed the 256x256 MXU, but keep >= 2 grid steps so the
    # "parallel" axis can be sharded across TensorCores (v7x megacore).
    row_mult = {4: 8, 2: 16, 1: 32}[jnp.dtype(compute_dtype).itemsize]
    tm = _round_up(max(1, min(block_m, M)), row_mult)
    if pl.cdiv(M, tm) < 2 and M > row_mult:
        tm = _round_up(pl.cdiv(M, 2), row_mult)
    grid = (pl.cdiv(M, tm),)   # partial last block handled by Pallas, no pad

    def row_spec(shape):
        return pl.BlockSpec(shape, lambda i: (i, 0))

    def const_spec(shape):
        # Constant index_map -> never re-fetched; single-buffer it so the
        # resident weights only cost one copy of VMEM.
        return pl.BlockSpec(shape, lambda i: (0, 0),
                            pipeline_mode=pl.Buffered(1))

    itemsize = jnp.dtype(compute_dtype).itemsize
    flops = int(2 * M * (din * 2 * dh + dh * dout) + 6 * M * dh)
    bytes_accessed = int(M * din * itemsize
                         + w1.size * itemsize + w2t.size * itemsize
                         + (b1.size + b2r.size) * 4
                         + M * dout * jnp.dtype(out_dtype).itemsize)
    cost = pl.CostEstimate(flops=flops, transcendentals=int(M * dh),
                           bytes_accessed=bytes_accessed)

    out = pl.pallas_call(
        _geglu_kernel,
        out_shape=jax.ShapeDtypeStruct((M, dout), out_dtype),
        grid=grid,
        in_specs=[
            row_spec((tm, din)),            # x row tile
            const_spec((din, 2 * dh)),      # fused gate weight (VMEM-resident)
            const_spec((1, 2 * dh)),        # fused gate bias
            const_spec((dh, dout)),         # fc2 weight (VMEM-resident)
            const_spec((1, dout)),          # fc2 bias
        ],
        out_specs=row_spec((tm, dout)),
        compiler_params=pltpu.CompilerParams(
            dimension_semantics=("parallel",),
            vmem_limit_bytes=_vmem_limit_bytes(),
        ),
        cost_estimate=cost,
    )(xf, w1, b1, w2t, b2r)

    # TODO(synk): for transformer-size dh the fully-resident weights exceed
    # v7x's 64 MiB VMEM; add a dh-tiled "arbitrary" reduction axis with an f32
    # accumulator scratch (pl.when init/finalize) when scaling up.
    # Dropout with p=0.0 is the identity; nothing to do.
    return out.reshape(*lead, dout)


def mlp_geglu_ref(x, w11, b11, w12, b12, w2, b2):
    """Pure-JAX reference mirroring the PyTorch forward (exact erf GELU)."""
    h = jax.nn.gelu(x @ w11.T + b11, approximate=False) * (x @ w12.T + b12)
    return h @ w2.T + b2


if __name__ == "__main__":
    key = jax.random.PRNGKey(0)
    B, N, Din, Dh, Dout = 2, 128, 128, 256, 128   # small, lane-aligned shapes

    ks = jax.random.split(key, 7)
    x = jax.random.normal(ks[0], (B, N, Din), dtype=jnp.float32)
    w11 = jax.random.normal(ks[1], (Dh, Din), jnp.float32) * (1.0 / math.sqrt(Din))
    b11 = jax.random.normal(ks[2], (Dh,), jnp.float32) * 0.01
    w12 = jax.random.normal(ks[3], (Dh, Din), jnp.float32) * (1.0 / math.sqrt(Din))
    b12 = jax.random.normal(ks[4], (Dh,), jnp.float32) * 0.01
    w2 = jax.random.normal(ks[5], (Dout, Dh), jnp.float32) * (1.0 / math.sqrt(Dh))
    b2 = jax.random.normal(ks[6], (Dout,), jnp.float32) * 0.01

    out = jax.block_until_ready(mlp_geglu(x, w11, b11, w12, b12, w2, b2))
    ref = mlp_geglu_ref(x, w11, b11, w12, b12, w2, b2)

    assert out.shape == (B, N, Dout), out.shape
    assert out.dtype == x.dtype, out.dtype
    max_err = float(jnp.max(jnp.abs(out - ref)))
    # bf16 matmul inputs + f32 accumulation vs pure-f32 reference.
    assert jnp.allclose(out, ref, atol=5e-2, rtol=5e-2), f"max abs err {max_err}"

    print("KERNEL_OK")
</pallas_src>

<mosaic_0001>
module attributes {stable_mosaic.version = 11 : i64} {
  func.func @_geglu_kernel(%arg0: i32, %arg1: memref<128x128xbf16, #tpu.memory_space<vmem>>, %arg2: memref<128x512xbf16, #tpu.memory_space<vmem>>, %arg3: memref<1x512xf32, #tpu.memory_space<vmem>>, %arg4: memref<256x128xbf16, #tpu.memory_space<vmem>>, %arg5: memref<1x128xf32, #tpu.memory_space<vmem>>, %arg6: memref<128x128xf32, #tpu.memory_space<vmem>>) attributes {dimension_semantics = [#tpu.dimension_semantics<parallel>], iteration_bounds = array<i64: 2>, scalar_prefetch = 0 : i64, scratch_operands = 0 : i64, tpu.core_type = #tpu.core_type<tc>, window_params = [{transform_indices = @transform_0, window_bounds = array<i64: 128, 128>}, {pipeline_mode = #tpu.pipeline_mode<synchronous>, transform_indices = @transform_1, window_bounds = array<i64: 128, 512>}, {pipeline_mode = #tpu.pipeline_mode<synchronous>, transform_indices = @transform_2, window_bounds = array<i64: 1, 512>}, {pipeline_mode = #tpu.pipeline_mode<synchronous>, transform_indices = @transform_3, window_bounds = array<i64: 256, 128>}, {pipeline_mode = #tpu.pipeline_mode<synchronous>, transform_indices = @transform_4, window_bounds = array<i64: 1, 128>}, {transform_indices = @transform_5, window_bounds = array<i64: 128, 128>}]} {
    %c0 = arith.constant 0 : index
    %c0_0 = arith.constant 0 : index
    %0 = vector.load %arg1[%c0, %c0_0] : memref<128x128xbf16, #tpu.memory_space<vmem>>, vector<128x128xbf16>
    %c0_1 = arith.constant 0 : index
    %c0_2 = arith.constant 0 : index
    %1 = vector.load %arg2[%c0_1, %c0_2] : memref<128x512xbf16, #tpu.memory_space<vmem>>, vector<128x512xbf16>
    %cst = arith.constant dense<0.000000e+00> : vector<128x512xf32>
    %2 = tpu.matmul %0, %1, %cst {dimension_numbers = #tpu.dot_dimension_numbers<[1], [0], [0], [1], [0, 0, 1, 1], [], []>} : vector<128x128xbf16>, vector<128x512xbf16>, vector<128x512xf32> -> vector<128x512xf32>
    %c0_3 = arith.constant 0 : index
    %c0_4 = arith.constant 0 : index
    %3 = vector.load %arg3[%c0_3, %c0_4] : memref<1x512xf32, #tpu.memory_space<vmem>>, vector<1x512xf32>
    %4 = vector.broadcast %3 : vector<1x512xf32> to vector<128x512xf32>
    %5 = arith.addf %2, %4 : vector<128x512xf32>
    %6 = vector.extract_strided_slice %5 {offsets = [0, 0], sizes = [128, 256], strides = [1, 1]} : vector<128x512xf32> to vector<128x256xf32>
    %7 = vector.extract_strided_slice %5 {offsets = [0, 256], sizes = [128, 256], strides = [1, 1]} : vector<128x512xf32> to vector<128x256xf32>
    %cst_5 = arith.constant 5.000000e-01 : f32
    %8 = vector.broadcast %cst_5 : f32 to vector<128x256xf32>
    %9 = arith.mulf %8, %6 : vector<128x256xf32>
    %cst_6 = arith.constant 0.707106769 : f32
    %10 = vector.broadcast %cst_6 : f32 to vector<128x256xf32>
    %11 = arith.mulf %6, %10 : vector<128x256xf32>
    %12 = math.erf %11 : vector<128x256xf32>
    %cst_7 = arith.constant 1.000000e+00 : f32
    %13 = vector.broadcast %cst_7 : f32 to vector<128x256xf32>
    %14 = arith.addf %13, %12 : vector<128x256xf32>
    %15 = arith.mulf %9, %14 : vector<128x256xf32>
    %16 = arith.mulf %15, %7 : vector<128x256xf32>
    %17 = arith.truncf %16 : vector<128x256xf32> to vector<128x256xbf16>
    %c0_8 = arith.constant 0 : index
    %c0_9 = arith.constant 0 : index
    %18 = vector.load %arg4[%c0_8, %c0_9] : memref<256x128xbf16, #tpu.memory_space<vmem>>, vector<256x128xbf16>
    %cst_10 = arith.constant dense<0.000000e+00> : vector<128x128xf32>
    %19 = tpu.matmul %17, %18, %cst_10 {dimension_numbers = #tpu.dot_dimension_numbers<[1], [0], [0], [1], [0, 0, 1, 1], [], []>} : vector<128x256xbf16>, vector<256x128xbf16>, vector<128x128xf32> -> vector<128x128xf32>
    %c0_11 = arith.constant 0 : index
    %c0_12 = arith.constant 0 : index
    %20 = vector.load %arg5[%c0_11, %c0_12] : memref<1x128xf32, #tpu.memory_space<vmem>>, vector<1x128xf32>
    %21 = vector.broadcast %20 : vector<1x128xf32> to vector<128x128xf32>
    %22 = arith.addf %19, %21 : vector<128x128xf32>
    %c0_13 = arith.constant 0 : index
    %c0_14 = arith.constant 0 : index
    %23 = vector.load %arg6[%c0_13, %c0_14] : memref<128x128xf32, #tpu.memory_space<vmem>>, vector<128x128xf32>
    tpu.vector_store %arg6[%c0_13, %c0_14], %22 {strides = array<i32>} : memref<128x128xf32, #tpu.memory_space<vmem>>, vector<128x128xf32>,
    return
  }
  func.func @transform_0(%arg0: i32) -> (i32, i32) {
    %c0_i32 = arith.constant 0 : i32
    %c0_i32_0 = arith.constant 0 : i32
    return %arg0, %c0_i32 : i32, i32
  }
  func.func @transform_1(%arg0: i32) -> (i32, i32) {
    %c0_i32 = arith.constant 0 : i32
    %c0_i32_0 = arith.constant 0 : i32
    %c0_i32_1 = arith.constant 0 : i32
    return %c0_i32, %c0_i32_0 : i32, i32
  }
  func.func @transform_2(%arg0: i32) -> (i32, i32) {
    %c0_i32 = arith.constant 0 : i32
    %c0_i32_0 = arith.constant 0 : i32
    %c0_i32_1 = arith.constant 0 : i32
    return %c0_i32, %c0_i32_0 : i32, i32
  }
  func.func @transform_3(%arg0: i32) -> (i32, i32) {
    %c0_i32 = arith.constant 0 : i32
    %c0_i32_0 = arith.constant 0 : i32
    %c0_i32_1 = arith.constant 0 : i32
    return %c0_i32, %c0_i32_0 : i32, i32
  }
  func.func @transform_4(%arg0: i32) -> (i32, i32) {
    %c0_i32 = arith.constant 0 : i32
    %c0_i32_0 = arith.constant 0 : i32
    %c0_i32_1 = arith.constant 0 : i32
    return %c0_i32, %c0_i32_0 : i32, i32
  }
  func.func @transform_5(%arg0: i32) -> (i32, i32) {
    %c0_i32 = arith.constant 0 : i32
    %c0_i32_0 = arith.constant 0 : i32
    return %arg0, %c0_i32 : i32, i32
  }
}

</mosaic_0001>

<bundles_post_ra>
// kernel: tpu_custom_call.1
= control target key start
LH: loop header
LB: loop body
LE: loop exit
PB: predicated region body
PF: predicated region fallthrough
CT: control target
= control target key end

     0   :  { %10 = vsyncpa [#allocation3], 0  ;;  %s2497_s0 = inlined_call_operand.hbm [shape: bf16[256,128], index: 0, kind: input, shape index: {}]   ;;  %s2498_s1 = inlined_call_operand.hbm [shape: bf16[128,512], index: 1, kind: input, shape index: {}]   ;;  %s2499_s2 = inlined_call_operand.vmem [shape: f32[1,512], index: 2, kind: input, shape index: {}]   ;;  %s2500_s3 = inlined_call_operand.hbm [shape: bf16[256,128], index: 3, kind: input, shape index: {}]   ;;  %s2501_s4 = inlined_call_operand.vmem [shape: f32[1,128], index: 4, kind: input, shape index: {}]   ;;  %s2502_s5 = inlined_call_operand.hbm [shape: f32[256,128], index: 5, kind: output, shape index: {}]  }
   0x1   :  { %12 = vsyncpa [#allocation3 + $0x1], 0 }
   0x2   :  { %13 = vsyncpa [#allocation6], 0 }
   0x3   :  { %14 = vsyncpa [#allocation4], 0 }
   0x4   :  { %16 = vsyncpa [#allocation4 + $0x1], 0  ;;  %s1907_s18 = smov 0   ;;  %s1909_s19 = smov 0  }
   0x5   :  { %s1911_s20 = smov 0   ;;  %s1913_s21 = smov 0  }
   0x6 LB: > { %s1928_s22 = sadd.s32 4294967295, %s1864_s21   ;;  %s1341_s23 = sadd.s32 4294967294, %s1864_s21   ;;  %s1864_s21 = sphi %s1913_s21, %s2540_s21   ;;  %s1860_s20 = sphi %s1911_s20, %s2539_s20   ;;  %s1856_s19 = sphi %s1909_s19, %s2538_s19   ;;  %s1852_s18 = sphi %s1907_s18, %s2537_s18  }
   0x7   : > { %p42_p0 = scmp.ne.s32.totalorder %s1856_s19, %s1852_s18  ;;  %p2503_p1 = scmp.eq.s32.totalorder %s1928_s22, 0 }
   0x8   : > { %p156_p3 = scmp.eq.s32.totalorder %s1341_s23, 1  ;;  %p1342_p5 = scmp.ge.s32.totalorder %s1864_s21, 1 }
   0x9   : > { %p1937_p4 = por %p2503_p1, %p42_p0  ;;  %p163_p7 = scmp.lt.s32.totalorder %s1864_s21, 3 }
   0xa   : > { %p1942_p6 = por %p156_p3, %p42_p0  ;;  %s1866_s27 = smov [#allocation5]  }
   0xb   : > { %s2508_s24 = scalar_select %p1937_p4, 1, 0 }
   0xc   : > { %s2509_s25 = scalar_select %p1942_p6, 1, 0 }
   0xd   : > { %p1947_p8 = pnand %p1342_p5, %p163_p7  ;;  %s175_s28 = sshll.u32 %s1866_s27, 4  ;;  %s1951_s28 = int_to_ptr.vmem [resolvable:$true] %s175_s28 }
   0xe   : > { %s1867_s30 = smov [#allocation7]   ;;  %s1708_s9 = scalar_lea.hbm %s2498_s1, 4096 }
   0xf   : > { %p1510_p9 = pneg %p1947_p8  ;;  %s191_s6 = sshll.u32 %s1867_s30, 4  ;;  %s1962_s6 = int_to_ptr.vmem [resolvable:$true] %s191_s6 }
  0x10   : > { %p1709_p12 = scmp.ne.s32.totalorder %s2498_s1, %s1708_s9  ;;  %p1715_p5 = scmp.lt.u32.totalorder %s1708_s9, %s2498_s1 }
  0x11   : > { %p1958_p11 = pnand %p1510_p9, %p2503_p1 }
  0x13   : > { %p1710_p13 = pneg %p1958_p11 }
  0x15   : > { %p1711_p0 = pnand %p1710_p13, %p1709_p12 }
  0x17   : > { %p1712_p3 = pneg %p1711_p0 }
  0x19   : > { %p1717_p7 = pnand %p1715_p5, %p1712_p3 }
  0x1b   : > { %1720 = shalt.err (!%p1717_p7)
}
  0x1c   : > { %s1721_s14 = scalar_lea.vmem %s1951_s28, 4096  ;;  %p1729_p2 = scmp.lt.s32.totalorder %s1951_s28, %s1951_s28 }
  0x1d   : > { %p1722_p9 = scmp.ne.s32.totalorder %s1951_s28, %s1721_s14  ;;  %p1730_p12 = scmp.lt.s32.totalorder %s1721_s14, %s1721_s14 }
  0x1f   : > { %p1724_p10 = pnand %p1722_p9, %p1710_p13  ;;  %p1731_p0 = por %p1730_p12, %p1729_p2 }
  0x21   : > { %p1725_p1 = pneg %p1724_p10 }
  0x23   : > { %p1732_p6 = pnand %p1731_p0, %p1725_p1 }
  0x25   : > { %1735 = shalt.err (!%p1732_p6)
}
  0x26   : > { %s1868_s15 = smov 256   ;;  %s1869_s16 = smov 16  }
  0x27   : > { %1513 = dma.hbm_to_vmem [thread:$0]  (!%p1958_p11), %s2498_s1, 4096, %s1951_s28, [#allocation6], %s1868_s15, %s1868_s15, %s1869_s16  }
  0x28   : > { %s1736_s7 = scalar_lea.hbm %s2500_s3, 2048 }
  0x29   : > { %p1737_p2 = scmp.ne.s32.totalorder %s2500_s3, %s1736_s7  ;;  %p1743_p10 = scmp.lt.u32.totalorder %s1736_s7, %s2500_s3 }
  0x2b   : > { %p1739_p1 = pnand %p1737_p2, %p1710_p13 }
  0x2d   : > { %p1740_p6 = pneg %p1739_p1 }
  0x2f   : > { %p1745_p3 = pnand %p1743_p10, %p1740_p6 }
  0x31   : > { %1748 = shalt.err (!%p1745_p3)
}
  0x32   : > { %s1749_s28 = scalar_lea.vmem %s1962_s6, 2048  ;;  %p1757_p12 = scmp.lt.s32.totalorder %s1962_s6, %s1962_s6 }
  0x33   : > { %p1750_p5 = scmp.ne.s32.totalorder %s1962_s6, %s1749_s28  ;;  %p1758_p0 = scmp.lt.s32.totalorder %s1749_s28, %s1749_s28 }
  0x35   : > { %p1752_p7 = pnand %p1750_p5, %p1710_p13  ;;  %p1759_p2 = por %p1758_p0, %p1757_p12 }
  0x37   : > { %p1753_p9 = pneg %p1752_p7 }
  0x39   : > { %p1760_p1 = pnand %p1759_p2, %p1753_p9 }
  0x3b   : > { %1763 = shalt.err (!%p1760_p1)
}
  0x3c   : > { %s1870_s12 = smov 64   ;;  %s1871_s13 = smov 4  }
  0x3d   : > { %1516 = dma.hbm_to_vmem [thread:$0]  (!%p1958_p11), %s2500_s3, 2048, %s1962_s6, [#allocation6], %s1870_s12, %s1870_s12, %s1871_s13  }
  0x3e   : > { %s2020_s16 = sadd.s32 1, %s1864_s21   ;;  %s29_s23 = sadd.s32 1, %s1860_s20 }
  0x3f   : > { %s26_s17 = ssub.s32 %s1864_s21, %s2020_s16  ;;  %p36_p6 = scmp.ne.s32.totalorder %s1860_s20, %s1856_s19 }
  0x40   : > { %p27_p13 = scmp.eq.s32.totalorder %s26_s17, 0  ;;  %p37_p10 = scmp.eq.s32.totalorder %s1864_s21, 0 }
  0x41   : > { %p2512_p5 = scmp.eq.s32.totalorder %s1928_s22, 1  ;;  %p1527_p9 = scmp.lt.s32.totalorder %s1864_s21, 2 }
  0x42   : > { %s2029_s27 = scalar_select %p27_p13, %s1860_s20, %s29_s23  }
  0x43   : > { %p38_p3 = por %p37_p10, %p36_p6  ;;  %p2033_p7 = por %p2512_p5, %p36_p6 }
  0x44   : > { %s208_s30 = sand.u32 1, %s1860_s20   ;;  %s1416_s6 = sshll.u32 %s1864_s21, 10 }
  0x45   : > { %s2513_s29 = scalar_select %p2033_p7, 1, 0 }
  0x46   : > { %s1346_s7 = sshll.u32 %s208_s30, 6  ;;  %s2043_s10 = scalar_lea.hbm %s2497_s0, %s1416_s6 }
  0x47   : > { %s212_s11 = scalar_lea.vmem [#allocation2], %s1346_s7  ;;  %p2047_p11 = pnand %p1527_p9, %p38_p3 }
  0x48   : > { %s219_s28 = sshll.u32 %s212_s11, 4  ;;  %s2051_s15 = scalar_lea.sflag [#allocation3], %s208_s30  ;;  %s2045_s28 = int_to_ptr.vmem [resolvable:$true] %s219_s28 }
  0x49   : > { %s1764_s17 = scalar_lea.hbm %s2043_s10, 1024  ;;  %p1766_p0 = pneg %p2047_p11 }
  0x4a   : > { %p1765_p12 = scmp.ne.s32.totalorder %s2043_s10, %s1764_s17  ;;  %s1769_s6 = scalar_lea.hbm %s2497_s0, 2048 }
  0x4b   : > { %p1770_p13 = scmp.lt.u32.totalorder %s2043_s10, %s2497_s0  ;;  %p1771_p6 = scmp.lt.u32.totalorder %s1769_s6, %s1764_s17 }
  0x4c   : > { %p1767_p2 = pnand %p1766_p0, %p1765_p12  ;;  %p1773_p3 = scmp.lt.u32.totalorder %s1764_s17, %s2043_s10 }
  0x4d   : > { %p1772_p10 = por %p1771_p6, %p1770_p13 }
  0x4e   : > { %p1768_p1 = pneg %p1767_p2 }
  0x4f   : > { %p1774_p5 = por %p1773_p3, %p1772_p10 }
  0x51   : > { %p1775_p9 = pnand %p1774_p5, %p1768_p1 }
  0x53   : > { %1778 = shalt.err (!%p1775_p9)
}
  0x54   : > { %s1779_s30 = scalar_lea.vmem %s2045_s28, 1024  ;;  %s1872_s11 = smov [#allocation2]  }
  0x55   : > { %p1780_p12 = scmp.ne.s32.totalorder %s2045_s28, %s1779_s30  ;;  %s1784_s23 = sshll.u32 %s1872_s11, 4  ;;  %s1785_s23 = int_to_ptr.vmem [resolvable:$false] %s1784_s23 }
  0x56   : > { %s1786_s7 = scalar_lea.vmem %s1785_s23, 2048  ;;  %p1787_p4 = scmp.lt.s32.totalorder %s2045_s28, %s1785_s23 }
  0x57   : > { %p1782_p2 = pnand %p1780_p12, %p1766_p0  ;;  %p1788_p13 = scmp.lt.s32.totalorder %s1786_s7, %s1779_s30 }
  0x59   : > { %p1783_p7 = pneg %p1782_p2  ;;  %p1789_p6 = por %p1788_p13, %p1787_p4 }
  0x5b   : > { %p1790_p10 = pnand %p1789_p6, %p1783_p7 }
  0x5d   : > { %1793 = shalt.err (!%p1790_p10)
}
  0x5e   : > { %1520 = dma.hbm_to_vmem [thread:$0]  (!%p2047_p11), %s2043_s10, 1024, %s2045_s28, %s2051_s15, %s1870_s12, %s1870_s12, %s1871_s13  }
  0x5f   : > { %231 = sbr.rel (%p1947_p8) target bundleno = 687 (0x2af), region = 40 }
  0x66   : > { %s2085_s17 = sand.u32 1, %s1856_s19   ;;  %p2515_p4 = scmp.ne.s32.totalorder %s2508_s24, 0 }
  0x67   : > { %s1350_s6 = sshll.u32 %s2085_s17, 6  ;;  %s234_s8 = scalar_lea.sflag [#allocation3], %s2085_s17 }
  0x68   : > { %s2089_s9 = scalar_lea.vmem [#allocation2], %s1350_s6 }
  0x69   : > { %1839 = dma.done.wait (%p2515_p4), %s234_s8, 1024  }
  0x6a   : > { %1841 = vsyncadd (%p2515_p4), %s234_s8, 4294966272  ;;  %p2516_p7 = scmp.eq.s32.totalorder %s1928_s22, 0 }
  0x6c   : > { %1843 = dma.done.wait (%p2516_p7), [#allocation6], 6144   ;;  %p2517_p8 = pmov %p2516_p7 }
  0x6d   : > { %v1873_v0 = vmov 0   ;;  %v1572_v1 = vld [vmem:[#allocation5 + $0x4] ss:$16 sps:$4 sm:$0xff]   ;;  %v1574_v2 = vld [vmem:[#allocation5] ss:$16 sps:$4 sm:$0xff]   ;;  %v1604_v24 = vld [vmem:[%s2089_s9 + $0x8] sm:$0xff]   ;;  %v325_v57 = vlaneseq }
  0x6e   : > { %1845 = vsyncadd (%p2517_p8), [#allocation6], 4294961152  ;;  %585 = vmatprep.mubr.bf16.mxu0 %v1873_v0  ;;  %625 = vmatprep.mubr.bf16.mxu1 %v1873_v0  ;;  %v1575_v3 = vld [vmem:[#allocation5 + $0x24] ss:$16 sps:$4 sm:$0xff]   ;;  %v1577_v4 = vld [vmem:[#allocation5 + $0x20] ss:$16 sps:$4 sm:$0xff]  }
  0x6f   : > { %553 = vmatprep.subr.bf16.mxu0 %v1572_v1  ;;  %1482 = vmatprep.subr.bf16.mxu1 %v1572_v1  ;;  %v1578_v5 = vld [vmem:[#allocation5 + $0x44] ss:$16 sps:$4 sm:$0xff]   ;;  %v1580_v6 = vld [vmem:[#allocation5 + $0x40] ss:$16 sps:$4 sm:$0xff]   ;;  %v1600_v18 = vld [vmem:[#allocation5 + $0xc] ss:$16 sps:$4 sm:$0xff]  }
  0x70   : > { %554 = vmatpush1.bf16.msra.mxu0 %v1574_v2  ;;  %1490 = vmatpush1.bf16.msra.mxu1 %v1574_v2  ;;  %v1581_v7 = vld [vmem:[#allocation5 + $0x64] ss:$16 sps:$4 sm:$0xff]   ;;  %v1583_v8 = vld [vmem:[#allocation5 + $0x60] ss:$16 sps:$4 sm:$0xff]   ;;  %v1598_v20 = vld [vmem:[#allocation5 + $0x8] ss:$16 sps:$4 sm:$0xff]  }
  0x71   : > { %555 = vmatprep.subr.bf16.mxu0 %v1575_v3  ;;  %1483 = vmatprep.subr.bf16.mxu1 %v1575_v3  ;;  %v1584_v9 = vld [vmem:[#allocation5 + $0x84] ss:$16 sps:$4 sm:$0xff]   ;;  %v1586_v10 = vld [vmem:[#allocation5 + $0x80] ss:$16 sps:$4 sm:$0xff]   ;;  %v1603_v21 = vld [vmem:[#allocation5 + $0x2c] ss:$16 sps:$4 sm:$0xff]  }
  0x72   : > { %v1587_v11 = vld [vmem:[#allocation5 + $0xa4] ss:$16 sps:$4 sm:$0xff]   ;;  %v1589_v12 = vld [vmem:[#allocation5 + $0xa0] ss:$16 sps:$4 sm:$0xff]   ;;  %v1601_v22 = vld [vmem:[#allocation5 + $0x28] ss:$16 sps:$4 sm:$0xff]  }
  0x73   : > { %v1590_v13 = vld [vmem:[#allocation5 + $0xc4] ss:$16 sps:$4 sm:$0xff]   ;;  %v1592_v14 = vld [vmem:[#allocation5 + $0xc0] ss:$16 sps:$4 sm:$0xff]   ;;  %v1608_v23 = vld [vmem:[#allocation5 + $0x4c] ss:$16 sps:$4 sm:$0xff]  }
  0x74   : > { %556 = vmatpush1.bf16.msra.mxu0 %v1577_v4  ;;  %1491 = vmatpush1.bf16.msra.mxu1 %v1577_v4  ;;  %v1593_v15 = vld [vmem:[#allocation5 + $0xe4] ss:$16 sps:$4 sm:$0xff]   ;;  %v1595_v16 = vld [vmem:[#allocation5 + $0xe0] ss:$16 sps:$4 sm:$0xff]   ;;  %v1605_v25 = vld [vmem:[%s2089_s9 + $0x28] sm:$0xff]   ;;  %v2123_v60 = vshrl.u32 %v325_v57, 7 }
  0x75   : > { %557 = vmatprep.subr.bf16.mxu0 %v1578_v5  ;;  %1484 = vmatprep.subr.bf16.mxu1 %v1578_v5  ;;  %v1596_v17 = vld [vmem:[%s2089_s9] sm:$0xff]   ;;  %v1606_v26 = vld [vmem:[#allocation5 + $0x48] ss:$16 sps:$4 sm:$0xff]   ;;  %v1611_v27 = vld [vmem:[#allocation5 + $0x6c] ss:$16 sps:$4 sm:$0xff]   ;;  %s1353_s12 = sshll.u32 %s2085_s17, 7 }
  0x76   : > { %v1597_v19 = vld [vmem:[%s2089_s9 + $0x20] sm:$0xff]   ;;  %v1609_v28 = vld [vmem:[#allocation5 + $0x68] ss:$16 sps:$4 sm:$0xff]   ;;  %v1616_v29 = vld [vmem:[#allocation5 + $0x8c] ss:$16 sps:$4 sm:$0xff]   ;;  %v327_v1 = vsub.s32 0, %v2123_v60 }
  0x77   : > { %v1612_v30 = vld [vmem:[%s2089_s9 + $0x10] sm:$0xff]   ;;  %v1614_v32 = vld [vmem:[#allocation5 + $0x88] ss:$16 sps:$4 sm:$0xff]   ;;  %v1619_v33 = vld [vmem:[#allocation5 + $0xac] ss:$16 sps:$4 sm:$0xff]   ;;  %v331_v5 = vsub.s32 1, %v2123_v60 }
  0x78   : > { %558 = vmatpush1.bf16.msra.mxu0 %v1580_v6  ;;  %1492 = vmatpush1.bf16.msra.mxu1 %v1580_v6  ;;  %v1613_v31 = vld [vmem:[%s2089_s9 + $0x30] sm:$0xff]   ;;  %v1617_v34 = vld [vmem:[#allocation5 + $0xa8] ss:$16 sps:$4 sm:$0xff]   ;;  %v1624_v35 = vld [vmem:[#allocation5 + $0xcc] ss:$16 sps:$4 sm:$0xff]   ;;  %s2413_s28 = scalar_lea.vmem [#allocation8], %s1353_s12 }
  0x79   : > { %559 = vmatprep.subr.bf16.mxu0 %v1581_v7  ;;  %1485 = vmatprep.subr.bf16.mxu1 %v1581_v7  ;;  %v1620_v36 = vld [vmem:[%s2089_s9 + $0x18] sm:$0xff]   ;;  %v1628_v41 = vld [vmem:[#allocation7 + $0x40] sm:$0xff]   ;;  %v1630_v43 = vld [vmem:[#allocation7 + $0x48] sm:$0xff]   ;;  %s1417_s14 = sshll.u32 %s1928_s22, 11  ;;  %s1249_s15 = sshll.u32 %s2413_s28, 4  ;;  %s2450_s15 = int_to_ptr.vmem [resolvable:$true] %s1249_s15 }
  0x7a   : > { %v1621_v37 = vld [vmem:[%s2089_s9 + $0x38] sm:$0xff]   ;;  %v1629_v42 = vld [vmem:[#allocation7] sm:$0xff]   ;;  %v1631_v44 = vld [vmem:[#allocation7 + $0x8] sm:$0xff]   ;;  %s2448_s23 = scalar_lea.hbm %s2502_s5, %s1417_s14  ;;  %s1236_s22 = scalar_lea.sflag [#allocation4], %s2085_s17 }
  0x7b   : > { %v1622_v38 = vld [vmem:[#allocation5 + $0xc8] ss:$16 sps:$4 sm:$0xff]   ;;  %v1627_v39 = vld [vmem:[#allocation5 + $0xec] ss:$16 sps:$4 sm:$0xff]   ;;  %v1632_v45 = vld [vmem:[#allocation7 + $0x50] sm:$0xff]   ;;  %s1794_s7 = scalar_lea.vmem %s2450_s15, 2048 }
  0x7c   : > { %560 = vmatpush1.bf16.msra.mxu0 %v1583_v8  ;;  %1493 = vmatpush1.bf16.msra.mxu1 %v1583_v8  ;;  %v1625_v40 = vld [vmem:[#allocation5 + $0xe8] ss:$16 sps:$4 sm:$0xff]   ;;  %v1633_v46 = vld [vmem:[#allocation7 + $0x10] sm:$0xff]   ;;  %v1636_v49 = vld [vmem:[#allocation7 + $0x60] sm:$0xff]   ;;  %p1795_p11 = scmp.ne.s32.totalorder %s2450_s15, %s1794_s7  ;;  %p2534_p0 = scmp.ne.s32.totalorder %s2513_s29, 0 }
  0x7d   : > { %561 = vmatprep.subr.bf16.mxu0 %v1584_v9  ;;  %1486 = vmatprep.subr.bf16.mxu1 %v1584_v9  ;;  %v1634_v47 = vld [vmem:[#allocation7 + $0x58] sm:$0xff]   ;;  %v1637_v50 = vld [vmem:[#allocation7 + $0x20] sm:$0xff]   ;;  %v1638_v51 = vld [vmem:[#allocation7 + $0x68] sm:$0xff]   ;;  %s1874_s6 = smov [#allocation8]  }
  0x7e   : > { %v1635_v48 = vld [vmem:[#allocation7 + $0x18] sm:$0xff]   ;;  %v1639_v52 = vld [vmem:[#allocation7 + $0x28] sm:$0xff]   ;;  %v1640_v53 = vld [vmem:[#allocation7 + $0x70] sm:$0xff]   ;;  %p1796_p1 = pnand %p1795_p11, %p2534_p0  ;;  %s1798_s8 = sshll.u32 %s1874_s6, 4  ;;  %s1799_s8 = int_to_ptr.vmem [resolvable:$false] %s1798_s8 }
  0x7f   : > { %v1641_v54 = vld [vmem:[#allocation7 + $0x30] sm:$0xff]   ;;  %v1642_v55 = vld [vmem:[#allocation7 + $0x78] sm:$0xff]   ;;  %v2129_v4 = vld [vmem:[%s2499_s2] sm:$0xf]  ;;  %s1800_s9 = scalar_lea.vmem %s1799_s8, 4096  ;;  %p1801_p5 = scmp.lt.s32.totalorder %s2450_s15, %s1799_s8 }
  0x80   : > { %562 = vmatpush1.bf16.msra.mxu0 %v1586_v10  ;;  %1494 = vmatpush1.bf16.msra.mxu1 %v1586_v10  ;;  %v1643_v56 = vld [vmem:[#allocation7 + $0x38] sm:$0xff]   ;;  %v2133_v7 = vrot.slane %v2129_v4, %v327_v1  ;;  %v2138_v10 = vrot.slane %v2129_v4, %v331_v5  ;;  %p1797_p3 = pneg %p1796_p1  ;;  %p1802_p9 = scmp.lt.s32.totalorder %s1800_s9, %s1794_s7 }
  0x81   : > { %563 = vmatprep.subr.bf16.mxu0 %v1587_v11  ;;  %1487 = vmatprep.subr.bf16.mxu1 %v1587_v11 }
  0x82   : > { %p1803_p12 = por %p1802_p9, %p1801_p5 }
  0x84   : > { %564 = vmatpush1.bf16.msra.mxu0 %v1589_v12  ;;  %1495 = vmatpush1.bf16.msra.mxu1 %v1589_v12  ;;  %p1804_p2 = pnand %p1803_p12, %p1797_p3 }
  0x85   : > { %565 = vmatprep.subr.bf16.mxu0 %v1590_v13  ;;  %1488 = vmatprep.subr.bf16.mxu1 %v1590_v13 }
  0x88   : > { %566 = vmatpush1.bf16.msra.mxu0 %v1592_v14  ;;  %1496 = vmatpush1.bf16.msra.mxu1 %v1592_v14 }
  0x89   : > { %567 = vmatprep.subr.bf16.mxu0 %v1593_v15  ;;  %1489 = vmatprep.subr.bf16.mxu1 %v1593_v15 }
  0x8c   : > { %568 = vmatpush1.bf16.msra.mxu0 %v1595_v16  ;;  %1497 = vmatpush1.bf16.msra.mxu1 %v1595_v16 }
  0x8d   : > { %666 = vmatprep.subr.bf16.mxu1 %v1600_v18  ;;  %1418 = vmatprep.subr.bf16.mxu0 %v1628_v41 }
  0x8f   : > { %586 = vmatmul.mubr.bf16.vlgmr.msra.gmra.mrb[0].mxu0 %v1596_v17  ;;  %626 = vmatmul.mubr.bf16.vlgmr.msra.gmra.mrb[0].mxu1 %v1597_v19 }
  0x90   : > { %667 = vmatpush1.bf16.msra.mxu1 %v1598_v20  ;;  %595 = vmatprep.mubr.bf16.mxu0 %v1873_v0 }
  0x91   : > { %668 = vmatprep.subr.bf16.mxu1 %v1603_v21  ;;  %635 = vmatprep.mubr.bf16.mxu1 %v1873_v0 }
  0x92   : > { %1419 = vmatpush3.bf16.msra.mxu0 %v1629_v42 }
  0x93   : > { %1420 = vmatprep.subr.bf16.mxu0 %v1630_v43 }
  0x94   : > { %669 = vmatpush1.bf16.msra.mxu1 %v1601_v22 }
  0x95   : > { %670 = vmatprep.subr.bf16.mxu1 %v1608_v23 }
  0x96   : > { %1421 = vmatpush3.bf16.msra.mxu0 %v1631_v44 }
  0x97   : > { %596 = vmatmul.mubr.bf16.gmra.mrb[4].mxu0 %v1604_v24  ;;  %636 = vmatmul.mubr.bf16.gmra.mrb[4].mxu1 %v1605_v25 }
  0x98   : > { %671 = vmatpush1.bf16.msra.mxu1 %v1606_v26  ;;  %605 = vmatprep.mubr.bf16.mxu0 %v1873_v0 }
  0x99   : > { %672 = vmatprep.subr.bf16.mxu1 %v1611_v27  ;;  %645 = vmatprep.mubr.bf16.mxu1 %v1873_v0 }
  0x9a   : > { %1422 = vmatprep.subr.bf16.mxu0 %v1632_v45 }
  0x9b   : > { %1423 = vmatpush3.bf16.msra.mxu0 %v1633_v46 }
  0x9c   : > { %673 = vmatpush1.bf16.msra.mxu1 %v1609_v28  ;;  %1424 = vmatprep.subr.bf16.mxu0 %v1634_v47 }
  0x9d   : > { %674 = vmatprep.subr.bf16.mxu1 %v1616_v29 }
  0x9f   : > { %606 = vmatmul.mubr.bf16.gmra.mrb[8].mxu0 %v1612_v30  ;;  %646 = vmatmul.mubr.bf16.gmra.mrb[8].mxu1 %v1613_v31 }
  0xa0   : > { %675 = vmatpush1.bf16.msra.mxu1 %v1614_v32  ;;  %615 = vmatprep.mubr.bf16.mxu0 %v1873_v0 }
  0xa1   : > { %676 = vmatprep.subr.bf16.mxu1 %v1619_v33  ;;  %655 = vmatprep.mubr.bf16.mxu1 %v1873_v0 }
  0xa2   : > { %1425 = vmatpush3.bf16.msra.mxu0 %v1635_v48 }
  0xa3   : > { %1426 = vmatprep.subr.bf16.mxu0 %v1636_v49 }
  0xa4   : > { %677 = vmatpush1.bf16.msra.mxu1 %v1617_v34 }
  0xa5   : > { %678 = vmatprep.subr.bf16.mxu1 %v1624_v35 }
  0xa6   : > { %1427 = vmatpush3.bf16.msra.mxu0 %v1637_v50 }
  0xa7   : > { %616 = vmatmul.mubr.bf16.gmra.mrb[12].mxu0 %v1620_v36  ;;  %656 = vmatmul.mubr.bf16.gmra.mrb[12].mxu1 %v1621_v37 }
  0xa8   : > { %679 = vmatpush1.bf16.msra.mxu1 %v1622_v38  ;;  %698 = vmatprep.mubr.bf16.mxu1 %v1873_v0 }
  0xa9   : > { %680 = vmatprep.subr.bf16.mxu1 %v1627_v39  ;;  %1428 = vmatprep.subr.bf16.mxu0 %v1638_v51 }
  0xaa   : > { %1429 = vmatpush3.bf16.msra.mxu0 %v1639_v52  ;;  %v335_v52 = vsub.s32 2, %v2123_v60 }
  0xab   : > { %1430 = vmatprep.subr.bf16.mxu0 %v1640_v53 }
  0xac   : > { %681 = vmatpush1.bf16.msra.mxu1 %v1625_v40  ;;  %v2224_v1 = vrot.slane %v2129_v4, %v335_v52 }
  0xae   : > { %1431 = vmatpush3.bf16.msra.mxu0 %v1641_v54 }
  0xaf   : > { %699 = vmatmul.mubr.bf16.vlgmr.msra.gmra.mrb[16].mxu1 %v1596_v17  ;;  %1432 = vmatprep.subr.bf16.mxu0 %v1642_v55 }
  0xb0   : > { %708 = vmatprep.mubr.bf16.mxu1 %v1873_v0 }
  0xb2   : > { %1433 = vmatpush3.bf16.msra.mxu0 %v1643_v56  ;;  %v339_v56 = vsub.s32 3, %v2123_v60 }
  0xb4   : > { %v2228_v5 = vrot.slane %v2129_v4, %v339_v56 }
  0xb7   : > { %709 = vmatmul.mubr.bf16.gmra.mrb[20].mxu1 %v1604_v24 }
  0xb8   : > { %718 = vmatprep.mubr.bf16.mxu1 %v1873_v0 }
  0xbf   : > { %719 = vmatmul.mubr.bf16.gmra.mrb[24].mxu1 %v1612_v30 }
  0xc0   : > { %728 = vmatprep.mubr.bf16.mxu1 %v1873_v0 }
  0xc7   : > { %729 = vmatmul.mubr.bf16.gmra.mrb[28].mxu1 %v1620_v36 }
  0xc8   : > { %738 = vmatprep.mubr.bf16.mxu1 %v1873_v0 }
  0xcf   : > { %739 = vmatmul.mubr.bf16.gmra.mrb[32].mxu1 %v1597_v19 }
  0xd0   : > { %748 = vmatprep.mubr.bf16.mxu1 %v1873_v0 }
  0xd7   : > { %749 = vmatmul.mubr.bf16.gmra.mrb[36].mxu1 %v1605_v25 }
  0xd8   : > { %758 = vmatprep.mubr.bf16.mxu1 %v1873_v0 }
  0xdf   : > { %759 = vmatmul.mubr.bf16.gmra.mrb[40].mxu1 %v1613_v31 }
  0xe0   : > { %768 = vmatprep.mubr.bf16.mxu1 %v1873_v0 }
  0xe7   : > { %769 = vmatmul.mubr.bf16.gmra.mrb[44].mxu1 %v1621_v37 }
 0x162   : > { %v587_v58 = vpop.f32.mrb[0].mxu0  ;;  %v627_v59 = vpop.f32.mrb[0].mxu1 }
 0x163   : > { %v589_v61 = vpop.f32.mrb[1].mxu0  ;;  %v629_v62 = vpop.f32.mrb[1].mxu1  ;;  %v588_v15 = vadd.f32 %v587_v58, %v2133_v7  ;;  %v2148_v17 = vadd.f32 %v627_v59, %v2133_v7 }
 0x164   : > { %v591_v63 = vpop.f32.mrb[2].mxu0  ;;  %v631_v0 = vpop.f32.mrb[2].mxu1  ;;  %v2151_v18 = vadd.f32 %v589_v61, %v2138_v10  ;;  %v2178_v35 = vadd.f32 %v629_v62, %v2138_v10 }
 0x165   : > { %v593_v2 = vpop.f32.mrb[3].mxu0  ;;  %v633_v3 = vpop.f32.mrb[3].mxu1  ;;  %v2154_v19 = vadd.f32 %v591_v63, %v2133_v7  ;;  %v811_v20 = vmul.f32 0.70710677, %v588_v15  ;;  %v827_v24 = vmul.f32 0.70710677, %v2148_v17  ;;  %v2188_v40 = vadd.f32 %v631_v0, %v2133_v7 }
 0x166   : > { %v2157_v21 = vadd.f32 %v593_v2, %v2138_v10  ;;  %v812_v27 = vmul.f32 0.70710677, %v2151_v18  ;;  %v828_v44 = vmul.f32 0.70710677, %v2178_v35  ;;  %v2202_v48 = vadd.f32 %v633_v3, %v2138_v10 }
 0x167   : > { %v813_v31 = vmul.f32 0.70710677, %v2154_v19  ;;  %1644 = verf.f32 %v811_v20  ;;  %v829_v53 = vmul.f32 0.70710677, %v2188_v40  ;;  %v779_v2 = vmul.f32 0.5, %v588_v15 }
 0x168   : > { %v814_v36 = vmul.f32 0.70710677, %v2157_v21  ;;  %1646 = verf.f32 %v827_v24  ;;  %v830_v0 = vmul.f32 0.70710677, %v2202_v48  ;;  %v2242_v20 = vmul.f32 0.5, %v2148_v17 }
 0x169   : > { %1648 = verf.f32 %v812_v27  ;;  %v780_v4 = vmul.f32 0.5, %v2151_v18 }
 0x16a   : > { %v597_v6 = vpop.f32.mrb[4].mxu0  ;;  %v2135_v8 = vpop.f32.mrb[4].mxu1  ;;  %1650 = verf.f32 %v813_v31  ;;  %2524 = vst [vmem:[#allocation18_spill] sm:$0xff] %v2242_v20 }
 0x16b   : > { %v599_v9 = vpop.f32.mrb[5].mxu0  ;;  %v2140_v11 = vpop.f32.mrb[5].mxu1  ;;  %v2163_v25 = vadd.f32 %v597_v6, %v2133_v7  ;;  %1652 = verf.f32 %v814_v36 }
 0x16c   : > { %v601_v12 = vpop.f32.mrb[6].mxu0  ;;  %v2142_v13 = vpop.f32.mrb[6].mxu1  ;;  %v2167_v28 = vadd.f32 %v599_v9, %v2138_v10  ;;  %v2234_v9 = vadd.f32 %v2135_v8, %v2133_v7 }
 0x16d   : > { %v603_v14 = vpop.f32.mrb[7].mxu0  ;;  %v2145_v16 = vpop.f32.mrb[7].mxu1  ;;  %v2173_v32 = vadd.f32 %v601_v12, %v2133_v7  ;;  %v815_v38 = vmul.f32 0.70710677, %v2163_v25  ;;  %v2238_v12 = vadd.f32 %v2140_v11, %v2138_v10  ;;  %v782_v11 = vmul.f32 0.5, %v2157_v21 }
 0x16e   : > { %v2185_v39 = vadd.f32 %v603_v14, %v2138_v10  ;;  %v816_v41 = vmul.f32 0.70710677, %v2167_v28  ;;  %2522 = vst [vmem:[#allocation16_spill] sm:$0xff] %v2234_v9 }
 0x16f   : > { %v817_v42 = vmul.f32 0.70710677, %v2173_v32  ;;  %1654 = verf.f32 %v815_v38  ;;  %2523 = vst [vmem:[#allocation17_spill] sm:$0xff] %v2238_v12  ;;  %v2262_v21 = vmul.f32 0.70710677, %v2238_v12 }
 0x170   : > { %v818_v49 = vmul.f32 0.70710677, %v2185_v39  ;;  %1656 = verf.f32 %v816_v41  ;;  %v2258_v41 = vmul.f32 0.70710677, %v2234_v9 }
 0x171   : > { %1658 = verf.f32 %v817_v42  ;;  %v1645_v60 = vpop.eup %1644 }
 0x172   : > { %v607_v22 = vpop.f32.mrb[8].mxu0  ;;  %v2159_v23 = vpop.f32.mrb[8].mxu1  ;;  %1660 = verf.f32 %v828_v44  ;;  %v875_v17 = vadd.f32 1.0, %v1645_v60 }
 0x173   : > { %v609_v26 = vpop.f32.mrb[9].mxu0  ;;  %v2169_v29 = vpop.f32.mrb[9].mxu1  ;;  %v2193_v43 = vadd.f32 %v607_v22, %v2133_v7  ;;  %1662 = verf.f32 %v818_v49  ;;  %v786_v49 = vmul.f32 0.5, %v2185_v39 }
 0x174   : > { %v611_v30 = vpop.f32.mrb[10].mxu0  ;;  %v2175_v33 = vpop.f32.mrb[10].mxu1  ;;  %v2197_v45 = vadd.f32 %v609_v26, %v2138_v10  ;;  %1664 = verf.f32 %v829_v53  ;;  %v781_v26 = vmul.f32 0.5, %v2154_v19  ;;  %v784_v19 = vmul.f32 0.5, %v2167_v28 }
 0x175   : > { %v613_v34 = vpop.f32.mrb[11].mxu0  ;;  %v2181_v37 = vpop.f32.mrb[11].mxu1  ;;  %v2210_v54 = vadd.f32 %v611_v30, %v2133_v7  ;;  %v819_v57 = vmul.f32 0.70710677, %v2193_v43  ;;  %v907_v39 = vmul.f32 %v875_v17, %v779_v2 }
 0x176   : > { %v2215_v58 = vadd.f32 %v613_v34, %v2138_v10  ;;  %v820_v62 = vmul.f32 0.70710677, %v2197_v45  ;;  %v2230_v6 = vpop.eup %1646  ;;  %v783_v34 = vmul.f32 0.5, %v2163_v25  ;;  %v785_v25 = vmul.f32 0.5, %v2173_v32 }
 0x177   : > { %v821_v3 = vmul.f32 0.70710677, %v2210_v54  ;;  %1666 = verf.f32 %v819_v57  ;;  %v1649_v15 = vpop.eup %1648 }
 0x178   : > { %v822_v14 = vmul.f32 0.70710677, %v2215_v58  ;;  %1668 = verf.f32 %v820_v62  ;;  %v1651_v8 = vpop.eup %1650 }
 0x179   : > { %1670 = verf.f32 %v830_v0  ;;  %v1653_v31 = vpop.eup %1652  ;;  %v877_v53 = vadd.f32 1.0, %v1651_v8 }
 0x17a   : > { %v617_v46 = vpop.f32.mrb[12].mxu0  ;;  %v2199_v47 = vpop.f32.mrb[12].mxu1  ;;  %1672 = verf.f32 %v821_v3  ;;  %v878_v62 = vadd.f32 1.0, %v1653_v31 }
 0x17b   : > { %2518 = vst [vmem:[#allocation12_spill] sm:$0xff] %v2199_v47  ;;  %v619_v50 = vpop.f32.mrb[13].mxu0  ;;  %v2205_v51 = vpop.f32.mrb[13].mxu1  ;;  %v2246_v22 = vadd.f32 %v617_v46, %v2133_v7  ;;  %1674 = verf.f32 %v822_v14  ;;  %v876_v46 = vadd.f32 1.0, %v1649_v15  ;;  %v788_v15 = vmul.f32 0.5, %v2197_v45 }
 0x17c   : > { %2519 = vst [vmem:[#allocation13_spill] sm:$0xff] %v2205_v51  ;;  %v621_v55 = vpop.f32.mrb[14].mxu0  ;;  %v2217_v59 = vpop.f32.mrb[14].mxu1  ;;  %v2251_v27 = vadd.f32 %v619_v50, %v2138_v10 }
 0x17d   : > { %2520 = vst [vmem:[#allocation14_spill] sm:$0xff] %v2217_v59  ;;  %v623_v61 = vpop.f32.mrb[15].mxu0  ;;  %v2220_v63 = vpop.f32.mrb[15].mxu1  ;;  %v2255_v18 = vadd.f32 %v621_v55, %v2133_v7  ;;  %v823_v50 = vmul.f32 0.70710677, %v2246_v22  ;;  %v2268_v55 = vmul.f32 0.5, %v2193_v43  ;;  %v908_v2 = vmul.f32 %v876_v46, %v780_v4 }
 0x17e   : > { %2521 = vst [vmem:[#allocation15_spill] sm:$0xff] %v2220_v63  ;;  %v1655_v38 = vpop.eup %1654  ;;  %v824_v28 = vmul.f32 0.70710677, %v2251_v27  ;;  %v2272_v56 = vadd.f32 %v623_v61, %v2138_v10  ;;  %v789_v61 = vmul.f32 0.5, %v2210_v54  ;;  %v909_v59 = vmul.f32 %v877_v53, %v781_v26 }
 0x17f   : > { %v1657_v44 = vpop.eup %1656  ;;  %v825_v0 = vmul.f32 0.70710677, %v2255_v18  ;;  %v879_v3 = vadd.f32 1.0, %v1655_v38  ;;  %1676 = verf.f32 %v823_v50  ;;  %v910_v50 = vmul.f32 %v878_v62, %v782_v11 }
 0x180   : > { %v1659_v52 = vpop.eup %1658  ;;  %v880_v14 = vadd.f32 1.0, %v1657_v44  ;;  %v826_v43 = vmul.f32 0.70710677, %v2272_v56  ;;  %1678 = verf.f32 %v824_v28 }
 0x181   : > { %v2274_v57 = vpop.eup %1660  ;;  %v881_v12 = vadd.f32 1.0, %v1659_v52  ;;  %1680 = verf.f32 %v825_v0 }
 0x182   : > { %v700_v24 = vpop.f32.mrb[16].mxu1  ;;  %v1663_v60 = vpop.eup %1662  ;;  %1682 = verf.f32 %v826_v43  ;;  %v912_v53 = vmul.f32 %v880_v14, %v784_v19  ;;  %v2298_v19 = vadd.f32 %v2142_v13, %v2133_v7 }
 0x183   : > { %v702_v30 = vpop.f32.mrb[17].mxu1  ;;  %v701_v32 = vadd.f32 %v700_v24, %v2224_v1  ;;  %v2280_v8 = vpop.eup %1664  ;;  %v882_v45 = vadd.f32 1.0, %v1663_v60  ;;  %v913_v43 = vmul.f32 %v881_v12, %v785_v25  ;;  %1684 = verf.f32 %v2258_v41 }
 0x184   : > { %v704_v36 = vpop.f32.mrb[18].mxu1  ;;  %v1667_v63 = vpop.eup %1666  ;;  %v703_v24 = vadd.f32 %v702_v30, %v2228_v5  ;;  %v2304_v41 = vadd.f32 %v2145_v16, %v2138_v10  ;;  %1686 = verf.f32 %v2262_v21  ;;  %v2319_v21 = vadd.f32 %v2159_v23, %v2133_v7 }
 0x185   : > { %v706_v42 = vpop.f32.mrb[19].mxu1  ;;  %v939_v9 = vmul.f32 %v907_v39, %v701_v32  ;;  %v705_v17 = vadd.f32 %v704_v36, %v2224_v1  ;;  %v1669_v44 = vpop.eup %1668  ;;  %v883_v4 = vadd.f32 1.0, %v1667_v63  ;;  %v911_v36 = vmul.f32 %v879_v3, %v783_v34 }
 0x186   : > { %v707_v20 = vadd.f32 %v706_v42, %v2228_v5  ;;  %v2286_v51 = vpop.eup %1670  ;;  %v940_v54 = vmul.f32 %v908_v2, %v703_v24  ;;  %v884_v0 = vadd.f32 1.0, %v1669_v44  ;;  %v914_v63 = vmul.f32 %v882_v45, %v786_v49 }
 0x187   : > { %2525 = vst [vmem:[#allocation19_spill] sm:$0xff] %v2286_v51  ;;  %v1673_v30 = vpop.eup %1672  ;;  %v941_v46 = vmul.f32 %v909_v59, %v705_v17  ;;  %v790_v59 = vmul.f32 0.5, %v2215_v58  ;;  %v915_v25 = vmul.f32 %v883_v4, %v2268_v55 }
 0x188   : > { %v1675_v60 = vpop.eup %1674  ;;  %v942_v26 = vmul.f32 %v910_v50, %v707_v20  ;;  %v885_v62 = vadd.f32 1.0, %v1673_v30  ;;  %v916_v49 = vmul.f32 %v884_v0, %v788_v15  ;;  %v833_v15 = vmul.f32 0.70710677, %v2298_v19 }
 0x189   : > { %v971_v47 = vpack.c.bf16 %v941_v46, %v939_v9  ;;  %v886_v34 = vadd.f32 1.0, %v1675_v60  ;;  %v1677_v2 = vpop.eup %1676  ;;  %v834_v46 = vmul.f32 0.70710677, %v2304_v41  ;;  %v793_v60 = vmul.f32 0.5, %v2255_v18 }
 0x18a   : > { %v710_v31 = vpop.f32.mrb[20].mxu1  ;;  %v972_v24 = vpack.c.bf16 %v942_v26, %v940_v54  ;;  %v887_v30 = vadd.f32 1.0, %v1677_v2  ;;  %1688 = verf.f32 %v833_v15  ;;  %v796_v2 = vmul.f32 0.5, %v2178_v35 }
 0x18b   : > { %v712_v38 = vpop.f32.mrb[21].mxu1  ;;  %v711_v28 = vadd.f32 %v710_v31, %v2224_v1  ;;  %1690 = verf.f32 %v834_v46 }
 0x18c   : > { %v714_v52 = vpop.f32.mrb[22].mxu1  ;;  %v713_v39 = vadd.f32 %v712_v38, %v2228_v5  ;;  %1154 = vmatprep.mubr.bf16.mxu0 %v972_v24  ;;  %v1679_v38 = vpop.eup %1678 }
 0x18d   : > { %v716_v32 = vpop.f32.mrb[23].mxu1  ;;  %v715_v42 = vadd.f32 %v714_v52, %v2224_v1  ;;  %v2291_v51 = vmul.f32 %v911_v36, %v711_v28  ;;  %1155 = vmatmul.mubr.bf16.vlgmr.msra.gmra.mrb[16].mxu0 %v971_v47  ;;  %v917_v52 = vmul.f32 %v885_v62, %v789_v61  ;;  %v1681_v50 = vpop.eup %1680  ;;  %v918_v28 = vmul.f32 %v886_v34, %v790_v59 }
 0x18e   : > { %v717_v11 = vadd.f32 %v716_v32, %v2228_v5  ;;  %v944_v31 = vmul.f32 %v912_v53, %v713_v39  ;;  %v1683_v32 = vpop.eup %1682  ;;  %v792_v61 = vmul.f32 0.5, %v2251_v27  ;;  %v888_v36 = vadd.f32 1.0, %v1679_v38 }
 0x18f   : > { %v945_v3 = vmul.f32 %v913_v43, %v715_v42  ;;  %v889_v0 = vadd.f32 1.0, %v1681_v50  ;;  %v794_v53 = vmul.f32 0.5, %v2272_v56  ;;  %v890_v42 = vadd.f32 1.0, %v1683_v32  ;;  %v2527_v50 = vld [vmem:[#allocation12_spill] sm:$0xff] }
 0x190   : > { %v946_v9 = vmul.f32 %v914_v63, %v717_v11  ;;  %v2330_v11 = vadd.f32 %v2175_v33, %v2133_v7  ;;  %v920_v24 = vmul.f32 %v888_v36, %v792_v61  ;;  %v835_v59 = vmul.f32 0.70710677, %v2319_v21 }
 0x191   : > { %v973_v13 = vpack.c.bf16 %v945_v3, %v2291_v51  ;;  %v791_v51 = vmul.f32 0.5, %v2246_v22  ;;  %v2325_v22 = vadd.f32 %v2169_v29, %v2138_v10  ;;  %v2335_v29 = vadd.f32 %v2181_v37, %v2138_v10 }
 0x192   : > { %v720_v20 = vpop.f32.mrb[24].mxu1  ;;  %v974_v55 = vpack.c.bf16 %v946_v9, %v944_v31  ;;  %v1685_v31 = vpop.eup %1684  ;;  %v921_v3 = vmul.f32 %v889_v0, %v793_v60  ;;  %v797_v38 = vmul.f32 0.5, %v2188_v40  ;;  %1692 = verf.f32 %v835_v59  ;;  %v2528_v40 = vld [vmem:[#allocation13_spill] sm:$0xff] }
 0x193   : > { %v721_v12 = vadd.f32 %v720_v20, %v2224_v1  ;;  %v722_v14 = vpop.f32.mrb[25].mxu1  ;;  %v919_v18 = vmul.f32 %v887_v30, %v791_v51  ;;  %v836_v9 = vmul.f32 0.70710677, %v2325_v22  ;;  %v2530_v51 = vld [vmem:[#allocation14_spill] sm:$0xff] }
 0x194   : > { %v723_v58 = vadd.f32 %v722_v14, %v2228_v5  ;;  %v724_v17 = vpop.f32.mrb[26].mxu1  ;;  %1162 = vmatprep.mubr.bf16.mxu0 %v974_v55  ;;  %v891_v14 = vadd.f32 1.0, %v2230_v6  ;;  %v798_v55 = vmul.f32 0.5, %v2202_v48  ;;  %v2529_v48 = vld [vmem:[#allocation18_spill] sm:$0xff]  ;;  %v2366_v30 = vadd.f32 %v2530_v51, %v2133_v7 }
 0x195   : > { %v2308_v44 = vmul.f32 %v915_v25, %v721_v12  ;;  %v725_v45 = vadd.f32 %v724_v17, %v2224_v1  ;;  %v726_v54 = vpop.f32.mrb[27].mxu1  ;;  %1163 = vmatmul.mubr.bf16.gmra.mrb[20].mxu0 %v973_v13  ;;  %v922_v25 = vmul.f32 %v890_v42, %v794_v53  ;;  %v1687_v17 = vpop.eup %1686  ;;  %v892_v13 = vadd.f32 1.0, %v2274_v57 }
 0x196   : > { %v948_v16 = vmul.f32 %v916_v49, %v723_v58  ;;  %v727_v47 = vadd.f32 %v726_v54, %v2228_v5  ;;  %v837_v58 = vmul.f32 0.70710677, %v2330_v11  ;;  %v2526_v54 = vld [vmem:[#allocation19_spill] sm:$0xff]  ;;  %1694 = verf.f32 %v836_v9  ;;  %v1689_v36 = vpop.eup %1688 }
 0x197   : > { %v949_v4 = vmul.f32 %v917_v52, %v725_v45  ;;  %v893_v52 = vadd.f32 1.0, %v2280_v8  ;;  %v894_v35 = vadd.f32 1.0, %v2526_v54  ;;  %v923_v32 = vmul.f32 %v891_v14, %v2529_v48 }
 0x198   : > { %v950_v39 = vmul.f32 %v918_v28, %v727_v47  ;;  %1696 = verf.f32 %v837_v58  ;;  %v2360_v28 = vadd.f32 %v2528_v40, %v2138_v10  ;;  %v924_v46 = vmul.f32 %v892_v13, %v796_v2 }
 0x199   : > { %v975_v26 = vpack.c.bf16 %v949_v4, %v2308_v44  ;;  %v838_v44 = vmul.f32 0.70710677, %v2335_v29  ;;  %v925_v42 = vmul.f32 %v893_v52, %v797_v38  ;;  %v801_v58 = vmul.f32 0.5, %v2298_v19 }
 0x19a   : > { %v730_v43 = vpop.f32.mrb[28].mxu1  ;;  %v976_v27 = vpack.c.bf16 %v950_v39, %v948_v16  ;;  %v2356_v16 = vadd.f32 %v2527_v50, %v2133_v7  ;;  %v2531_v39 = vld [vmem:[#allocation15_spill] sm:$0xff]  ;;  %v803_v51 = vmul.f32 0.5, %v2319_v21 }
 0x19b   : > { %v731_v23 = vadd.f32 %v730_v43, %v2224_v1  ;;  %v732_v62 = vpop.f32.mrb[29].mxu1  ;;  %1698 = verf.f32 %v838_v44  ;;  %v2371_v60 = vadd.f32 %v2531_v39, %v2138_v10  ;;  %v896_v10 = vadd.f32 1.0, %v1687_v17 }
 0x19c   : > { %v733_v56 = vadd.f32 %v732_v62, %v2228_v5  ;;  %v734_v63 = vpop.f32.mrb[30].mxu1  ;;  %1170 = vmatprep.mubr.bf16.mxu0 %v976_v27  ;;  %v1691_v27 = vpop.eup %1690  ;;  %v839_v7 = vmul.f32 0.70710677, %v2356_v16  ;;  %v895_v62 = vadd.f32 1.0, %v1685_v31  ;;  %v802_v44 = vmul.f32 0.5, %v2304_v41 }
 0x19d   : > { %v2339_v34 = vmul.f32 %v919_v18, %v731_v23  ;;  %v735_v33 = vadd.f32 %v734_v63, %v2224_v1  ;;  %v736_v20 = vpop.f32.mrb[31].mxu1  ;;  %1171 = vmatmul.mubr.bf16.gmra.mrb[24].mxu0 %v975_v26  ;;  %v926_v18 = vmul.f32 %v894_v35, %v798_v55  ;;  %v841_v63 = vmul.f32 0.70710677, %v2366_v30  ;;  %v1693_v2 = vpop.eup %1692 }
 0x19e   : > { %v952_v12 = vmul.f32 %v920_v24, %v733_v56  ;;  %v737_v37 = vadd.f32 %v736_v20, %v2228_v5  ;;  %v840_v56 = vmul.f32 0.70710677, %v2360_v28  ;;  %v842_v20 = vmul.f32 0.70710677, %v2371_v60 }
 0x19f   : > { %v953_v49 = vmul.f32 %v921_v3, %v735_v33  ;;  %v897_v3 = vadd.f32 1.0, %v1689_v36  ;;  %1700 = verf.f32 %v839_v7  ;;  %v899_v41 = vadd.f32 1.0, %v1693_v2 }
 0x1a0   : > { %v954_v45 = vmul.f32 %v922_v25, %v737_v37  ;;  %v898_v25 = vadd.f32 1.0, %v1691_v27  ;;  %1702 = verf.f32 %v840_v56  ;;  %v1695_v38 = vpop.eup %1694 }
 0x1a1   : > { %v977_v6 = vpack.c.bf16 %v953_v49, %v2339_v34  ;;  %v2532_v34 = vld [vmem:[#allocation16_spill] sm:$0xff]  ;;  %1704 = verf.f32 %v841_v63  ;;  %v929_v19 = vmul.f32 %v897_v3, %v801_v58 }
 0x1a2   : > { %v740_v57 = vpop.f32.mrb[32].mxu1  ;;  %v978_v47 = vpack.c.bf16 %v954_v45, %v952_v12  ;;  %v799_v33 = vmul.f32 0.5, %v2532_v34  ;;  %v2533_v12 = vld [vmem:[#allocation17_spill] sm:$0xff]  ;;  %v1697_v54 = vpop.eup %1696  ;;  %1706 = verf.f32 %v842_v20  ;;  %v930_v48 = vmul.f32 %v898_v25, %v802_v44 }
 0x1a3   : > { %v741_v8 = vadd.f32 %v740_v57, %v2224_v1  ;;  %v742_v15 = vpop.f32.mrb[33].mxu1  ;;  %v800_v37 = vmul.f32 0.5, %v2533_v12  ;;  %v807_v12 = vmul.f32 0.5, %v2356_v16  ;;  %v810_v44 = vmul.f32 0.5, %v2371_v60 }
 0x1a4   : > { %v743_v4 = vadd.f32 %v742_v15, %v2228_v5  ;;  %v744_v61 = vpop.f32.mrb[34].mxu1  ;;  %1178 = vmatprep.mubr.bf16.mxu0 %v978_v47  ;;  %v927_v17 = vmul.f32 %v895_v62, %v799_v33 }
 0x1a5   : > { %v2373_v0 = vmul.f32 %v923_v32, %v741_v8  ;;  %v745_v53 = vadd.f32 %v744_v61, %v2224_v1  ;;  %v746_v43 = vpop.f32.mrb[35].mxu1  ;;  %1179 = vmatmul.mubr.bf16.gmra.mrb[28].mxu0 %v977_v6  ;;  %v928_v52 = vmul.f32 %v896_v10, %v800_v37  ;;  %v1699_v47 = vpop.eup %1698  ;;  %v900_v6 = vadd.f32 1.0, %v1695_v38 }
 0x1a6   : > { %v956_v26 = vmul.f32 %v924_v46, %v743_v4  ;;  %v747_v23 = vadd.f32 %v746_v43, %v2228_v5  ;;  %v901_v4 = vadd.f32 1.0, %v1697_v54  ;;  %v804_v61 = vmul.f32 0.5, %v2325_v22 }
 0x1a7   : > { %v957_v24 = vmul.f32 %v925_v42, %v745_v53  ;;  %v902_v36 = vadd.f32 1.0, %v1699_v47  ;;  %v805_v53 = vmul.f32 0.5, %v2330_v11  ;;  %v931_v43 = vmul.f32 %v899_v41, %v803_v51 }
 0x1a8   : > { %v958_v59 = vmul.f32 %v926_v18, %v747_v23  ;;  %v932_v21 = vmul.f32 %v900_v6, %v804_v61 }
 0x1a9   : > { %v979_v9 = vpack.c.bf16 %v957_v24, %v2373_v0  ;;  %v1701_v7 = vpop.eup %1700  ;;  %v933_v24 = vmul.f32 %v901_v4, %v805_v53 }
 0x1aa   : > { %v750_v14 = vpop.f32.mrb[36].mxu1  ;;  %v980_v31 = vpack.c.bf16 %v958_v59, %v956_v26  ;;  %v806_v26 = vmul.f32 0.5, %v2335_v29  ;;  %v1703_v62 = vpop.eup %1702  ;;  %v903_v3 = vadd.f32 1.0, %v1701_v7 }
 0x1ab   : > { %v751_v49 = vadd.f32 %v750_v14, %v2224_v1  ;;  %v752_v13 = vpop.f32.mrb[37].mxu1  ;;  %v1705_v11 = vpop.eup %1704  ;;  %v904_v20 = vadd.f32 1.0, %v1703_v62  ;;  %v808_v14 = vmul.f32 0.5, %v2360_v28 }
 0x1ac   : > { %v753_v45 = vadd.f32 %v752_v13, %v2228_v5  ;;  %v754_v55 = vpop.f32.mrb[38].mxu1  ;;  %1186 = vmatprep.mubr.bf16.mxu0 %v980_v31  ;;  %v934_v34 = vmul.f32 %v902_v36, %v806_v26  ;;  %v1707_v33 = vpop.eup %1706  ;;  %v905_v37 = vadd.f32 1.0, %v1705_v11  ;;  %v935_v13 = vmul.f32 %v903_v3, %v807_v12 }
 0x1ad   : > { %v959_v35 = vmul.f32 %v927_v17, %v751_v49  ;;  %v755_v50 = vadd.f32 %v754_v55, %v2224_v1  ;;  %v756_v57 = vpop.f32.mrb[39].mxu1  ;;  %1187 = vmatmul.mubr.bf16.gmra.mrb[32].mxu0 %v979_v9  ;;  %v906_v31 = vadd.f32 1.0, %v1707_v33  ;;  %v809_v49 = vmul.f32 0.5, %v2366_v30 }
 0x1ae   : > { %v960_v40 = vmul.f32 %v928_v52, %v753_v45  ;;  %v757_v8 = vadd.f32 %v756_v57, %v2228_v5  ;;  %v936_v52 = vmul.f32 %v904_v20, %v808_v14 }
 0x1af   : > { %v961_v32 = vmul.f32 %v929_v19, %v755_v50  ;;  %v937_v54 = vmul.f32 %v905_v37, %v809_v49  ;;  %v938_v19 = vmul.f32 %v906_v31, %v810_v44 }
 0x1b0   : > { %v962_v15 = vmul.f32 %v930_v48, %v757_v8 }
 0x1b1   : > { %v981_v46 = vpack.c.bf16 %v961_v32, %v959_v35 }
 0x1b2   : > { %v760_v39 = vpop.f32.mrb[40].mxu1  ;;  %v982_v0 = vpack.c.bf16 %v962_v15, %v960_v40 }
 0x1b3   : > { %v761_v42 = vadd.f32 %v760_v39, %v2224_v1  ;;  %v762_v27 = vpop.f32.mrb[41].mxu1 }
 0x1b4   : > { %v763_v23 = vadd.f32 %v762_v27, %v2228_v5  ;;  %v764_v18 = vpop.f32.mrb[42].mxu1  ;;  %1194 = vmatprep.mubr.bf16.mxu0 %v982_v0 }
 0x1b5   : > { %v963_v56 = vmul.f32 %v931_v43, %v761_v42  ;;  %v765_v22 = vadd.f32 %v764_v18, %v2224_v1  ;;  %v766_v10 = vpop.f32.mrb[43].mxu1  ;;  %1195 = vmatmul.mubr.bf16.gmra.mrb[36].mxu0 %v981_v46 }
 0x1b6   : > { %v964_v63 = vmul.f32 %v932_v21, %v763_v23  ;;  %v767_v59 = vadd.f32 %v766_v10, %v2228_v5 }
 0x1b7   : > { %v965_v29 = vmul.f32 %v933_v24, %v765_v22 }
 0x1b8   : > { %v966_v9 = vmul.f32 %v934_v34, %v767_v59 }
 0x1b9   : > { %v983_v25 = vpack.c.bf16 %v965_v29, %v963_v56 }
 0x1ba   : > { %v770_v2 = vpop.f32.mrb[44].mxu1  ;;  %v984_v58 = vpack.c.bf16 %v966_v9, %v964_v63 }
 0x1bb   : > { %v771_v17 = vadd.f32 %v770_v2, %v2224_v1  ;;  %v772_v38 = vpop.f32.mrb[45].mxu1 }
 0x1bc   : > { %v773_v45 = vadd.f32 %v772_v38, %v2228_v5  ;;  %v774_v16 = vpop.f32.mrb[46].mxu1  ;;  %1202 = vmatprep.mubr.bf16.mxu0 %v984_v58 }
 0x1bd   : > { %v967_v55 = vmul.f32 %v935_v13, %v771_v17  ;;  %v775_v28 = vadd.f32 %v774_v16, %v2224_v1  ;;  %v776_v35 = vpop.f32.mrb[47].mxu1  ;;  %1203 = vmatmul.mubr.bf16.gmra.mrb[40].mxu0 %v983_v25  ;;  %v2410_v1 = vld [vmem:[%s2501_s4] ss:$0 sm:$0xff] }
 0x1be   : > { %v968_v50 = vmul.f32 %v936_v52, %v773_v45  ;;  %v777_v30 = vadd.f32 %v776_v35, %v2228_v5 }
 0x1bf   : > { %v969_v57 = vmul.f32 %v937_v54, %v775_v28 }
 0x1c0   : > { %v970_v47 = vmul.f32 %v938_v19, %v777_v30 }
 0x1c1   : > { %v985_v40 = vpack.c.bf16 %v969_v57, %v967_v55 }
 0x1c2   : > { %v986_v60 = vpack.c.bf16 %v970_v47, %v968_v50 }
 0x1c4   : > { %1210 = vmatprep.mubr.bf16.mxu0 %v986_v60 }
 0x1c5   : > { %1211 = vmatmul.mubr.bf16.gmra.mrb[44].mxu0 %v985_v40 }
 0x260   : > { %v1434_v8 = vpop.f32.mrb[16].mxu0 }
 0x261   : > { %v1435_v48 = vpop.f32.mrb[17].mxu0 }
 0x262   : > { %v1436_v41 = vadd.f32 %v1435_v48, %v1434_v8  ;;  %v1437_v32 = vpop.f32.mrb[18].mxu0 }
 0x263   : > { %v1438_v6 = vpop.f32.mrb[19].mxu0 }
 0x264   : > { %v1157_v5 = vadd.f32 %v1436_v41, %v2410_v1  ;;  %v1439_v15 = vadd.f32 %v1438_v6, %v1437_v32 }
 0x266   : > { %1219 = vst [vmem:[%s2413_s28] sm:$0xff] %v1157_v5  ;;  %v1160_v51 = vadd.f32 %v1439_v15, %v2410_v1 }
 0x268   : > { %1220 = vst [vmem:[%s2413_s28 + $0x8] sm:$0xff] %v1160_v51  ;;  %v1440_v4 = vpop.f32.mrb[20].mxu0 }
 0x269   : > { %v1441_v46 = vpop.f32.mrb[21].mxu0 }
 0x26a   : > { %v1442_v61 = vadd.f32 %v1441_v46, %v1440_v4  ;;  %v1443_v36 = vpop.f32.mrb[22].mxu0 }
 0x26b   : > { %v1444_v39 = vpop.f32.mrb[23].mxu0 }
 0x26c   : > { %v1165_v0 = vadd.f32 %v1442_v61, %v2410_v1  ;;  %v1445_v53 = vadd.f32 %v1444_v39, %v1443_v36 }
 0x26e   : > { %1221 = vst [vmem:[%s2413_s28 + $0x10] sm:$0xff] %v1165_v0  ;;  %v1168_v42 = vadd.f32 %v1445_v53, %v2410_v1 }
 0x270   : > { %1222 = vst [vmem:[%s2413_s28 + $0x18] sm:$0xff] %v1168_v42  ;;  %v1446_v43 = vpop.f32.mrb[24].mxu0 }
 0x271   : > { %v1447_v27 = vpop.f32.mrb[25].mxu0 }
 0x272   : > { %v1448_v7 = vadd.f32 %v1447_v27, %v1446_v43  ;;  %v1449_v26 = vpop.f32.mrb[26].mxu0 }
 0x273   : > { %v1450_v23 = vpop.f32.mrb[27].mxu0 }
 0x274   : > { %v1173_v21 = vadd.f32 %v1448_v7, %v2410_v1  ;;  %v1451_v18 = vadd.f32 %v1450_v23, %v1449_v26 }
 0x276   : > { %1223 = vst [vmem:[%s2413_s28 + $0x20] sm:$0xff] %v1173_v21  ;;  %v1176_v62 = vadd.f32 %v1451_v18, %v2410_v1 }
 0x278   : > { %1224 = vst [vmem:[%s2413_s28 + $0x28] sm:$0xff] %v1176_v62  ;;  %v1452_v56 = vpop.f32.mrb[28].mxu0 }
 0x279   : > { %v1453_v22 = vpop.f32.mrb[29].mxu0 }
 0x27a   : > { %v1454_v24 = vadd.f32 %v1453_v22, %v1452_v56  ;;  %v1455_v10 = vpop.f32.mrb[30].mxu0 }
 0x27b   : > { %v1456_v11 = vpop.f32.mrb[31].mxu0 }
 0x27c   : > { %v1181_v63 = vadd.f32 %v1454_v24, %v2410_v1  ;;  %v1457_v59 = vadd.f32 %v1456_v11, %v1455_v10 }
 0x27e   : > { %1225 = vst [vmem:[%s2413_s28 + $0x30] sm:$0xff] %v1181_v63  ;;  %v1184_v34 = vadd.f32 %v1457_v59, %v2410_v1 }
 0x280   : > { %1226 = vst [vmem:[%s2413_s28 + $0x38] sm:$0xff] %v1184_v34  ;;  %v1458_v33 = vpop.f32.mrb[32].mxu0 }
 0x281   : > { %v1459_v3 = vpop.f32.mrb[33].mxu0 }
 0x282   : > { %v1460_v29 = vadd.f32 %v1459_v3, %v1458_v33  ;;  %v1461_v20 = vpop.f32.mrb[34].mxu0 }
 0x283   : > { %v1462_v9 = vpop.f32.mrb[35].mxu0 }
 0x284   : > { %v1189_v12 = vadd.f32 %v1460_v29, %v2410_v1  ;;  %v1463_v37 = vadd.f32 %v1462_v9, %v1461_v20 }
 0x286   : > { %1227 = vst [vmem:[%s2413_s28 + $0x40] sm:$0xff] %v1189_v12  ;;  %v1192_v25 = vadd.f32 %v1463_v37, %v2410_v1 }
 0x288   : > { %1228 = vst [vmem:[%s2413_s28 + $0x48] sm:$0xff] %v1192_v25  ;;  %v1464_v14 = vpop.f32.mrb[36].mxu0 }
 0x289   : > { %v1465_v31 = vpop.f32.mrb[37].mxu0 }
 0x28a   : > { %v1466_v2 = vadd.f32 %v1465_v31, %v1464_v14  ;;  %v1467_v58 = vpop.f32.mrb[38].mxu0 }
 0x28b   : > { %v1468_v49 = vpop.f32.mrb[39].mxu0 }
 0x28c   : > { %v1197_v17 = vadd.f32 %v1466_v2, %v2410_v1  ;;  %v1469_v13 = vadd.f32 %v1468_v49, %v1467_v58 }
 0x28e   : > { %1229 = vst [vmem:[%s2413_s28 + $0x50] sm:$0xff] %v1197_v17  ;;  %v1200_v38 = vadd.f32 %v1469_v13, %v2410_v1 }
 0x290   : > { %1230 = vst [vmem:[%s2413_s28 + $0x58] sm:$0xff] %v1200_v38  ;;  %v1470_v44 = vpop.f32.mrb[40].mxu0 }
 0x291   : > { %v1471_v45 = vpop.f32.mrb[41].mxu0 }
 0x292   : > { %v1472_v52 = vadd.f32 %v1471_v45, %v1470_v44  ;;  %v1473_v16 = vpop.f32.mrb[42].mxu0 }
 0x293   : > { %v1474_v55 = vpop.f32.mrb[43].mxu0 }
 0x294   : > { %v1205_v28 = vadd.f32 %v1472_v52, %v2410_v1  ;;  %v1475_v54 = vadd.f32 %v1474_v55, %v1473_v16 }
 0x296   : > { %1231 = vst [vmem:[%s2413_s28 + $0x60] sm:$0xff] %v1205_v28  ;;  %v1208_v35 = vadd.f32 %v1475_v54, %v2410_v1 }
 0x298   : > { %1232 = vst [vmem:[%s2413_s28 + $0x68] sm:$0xff] %v1208_v35  ;;  %v1476_v50 = vpop.f32.mrb[44].mxu0 }
 0x299   : > { %v1477_v30 = vpop.f32.mrb[45].mxu0 }
 0x29a   : > { %v1478_v19 = vadd.f32 %v1477_v30, %v1476_v50  ;;  %v1479_v57 = vpop.f32.mrb[46].mxu0 }
 0x29b   : > { %v1480_v47 = vpop.f32.mrb[47].mxu0 }
 0x29c   : > { %v1213_v40 = vadd.f32 %v1478_v19, %v2410_v1  ;;  %v1481_v60 = vadd.f32 %v1480_v47, %v1479_v57 }
 0x29e   : > { %1233 = vst [vmem:[%s2413_s28 + $0x70] sm:$0xff] %v1213_v40  ;;  %v1216_v8 = vadd.f32 %v1481_v60, %v2410_v1 }
 0x2a0   : > { %1234 = vst [vmem:[%s2413_s28 + $0x78] sm:$0xff] %v1216_v8 }
 0x2a1   : > { %1807 = shalt.err (!%p1804_p2)
}
 0x2a2   : > { %s1808_s24 = scalar_lea.hbm %s2448_s23, 2048  ;;  %s1812_s13 = scalar_lea.hbm %s2502_s5, 4096 }
 0x2a3   : > { %p1809_p13 = scmp.ne.s32.totalorder %s2448_s23, %s1808_s24  ;;  %p1813_p4 = scmp.lt.u32.totalorder %s2448_s23, %s2502_s5 }
 0x2a4   : > { %p1814_p7 = scmp.lt.u32.totalorder %s1812_s13, %s1808_s24  ;;  %p1816_p11 = scmp.lt.u32.totalorder %s1808_s24, %s2448_s23 }
 0x2a5   : > { %p1810_p6 = pnand %p1809_p13, %p2534_p0 }
 0x2a6   : > { %p1815_p8 = por %p1814_p7, %p1813_p4 }
 0x2a7   : > { %p1811_p10 = pneg %p1810_p6 }
 0x2a8   : > { %p1817_p1 = por %p1816_p11, %p1815_p8 }
 0x2aa   : > { %p1818_p3 = pnand %p1817_p1, %p1811_p10 }
 0x2ac   : > { %1821 = shalt.err (!%p1818_p3)
}
 0x2ad   : > { %s1875_s14 = smov 128   ;;  %s1876_s30 = smov 8  }
 0x2ae   : > { %1508 = dma.vmem_to_hbm [thread:$0]  (%p2534_p0), %s2450_s15, 2048, %s2448_s23, %s1236_s22, %s1875_s14, %s1875_s14, %s1876_s30  }
 0x2af PF: > { %s1264_s11 = sand.u32 1, %s1852_s18   ;;  %p2535_p5 = scmp.ne.s32.totalorder %s2509_s25, 0 }
 0x2b0   : > { %p2536_p9 = scmp.ge.s32.totalorder %s1864_s21, 2  ;;  %s1265_s7 = scalar_lea.sflag [#allocation4], %s1264_s11 }
 0x2b2   : > { %p1522_p12 = pnand %p2536_p9, %p2535_p5 }
 0x2b4   : > { %1847 = dma.done.wait (!%p1522_p12), %s1265_s7, 2048  }
 0x2b5   : > { %1849 = vsyncadd (!%p1522_p12), %s1265_s7, 4294965248  ;;  %p19_p2 = scmp.ge.s32.totalorder %s2020_s16, 4   ;;  %s2537_s18 = smov %s1856_s19 }
 0x2b6   : > { %s2538_s19 = smov %s1860_s20  ;;  %s2539_s20 = smov %s2029_s27 }
 0x2b7   : > { %s2540_s21 = smov %s2020_s16  ;;  %21 = sbr.rel (!%p19_p2) target bundleno = 6 (0x6), region = 93 }
 0x2be   :  { %1270 = vsyncpa [#allocation3], 1 }
 0x2bf   :  { %1272 = vsyncpa [#allocation3 + $0x1], 1 }
 0x2c0   :  { %1273 = vsyncpa [#allocation6], 1 }
 0x2c1   :  { %1274 = vsyncpa [#allocation4], 1 }
 0x2c2   :  { %1276 = vsyncpa [#allocation4 + $0x1], 1 }

</bundles_post_ra>
